<compile_context>
chip_gen: v6e
topology: v6e:2x2x1
jax: 0.10.0
libtpu: 0.0.40
codegen_flags: <defaults>
</compile_context>

<pallas_src>
import functools

import jax
import jax.numpy as jnp
from jax.experimental import pallas as pl
from jax.experimental.pallas import tpu as pltpu


def _round_up(x, m):
    return (x + m - 1) // m * m


def _largest_chunk_mult128(total, cap):
    """Largest divisor of `total` that is a multiple of 128 and <= cap (0 if none)."""
    best = 0
    d = 1
    while d * d <= total:
        if total % d == 0:
            for c in (d, total // d):
                if c % 128 == 0 and c <= cap:
                    best = max(best, c)
        d += 1
    return best


def _gnneck_kernel(x_ref, x0_ref, w_ref, b_ref, o_ref, sum_ref, sq_ref, *,
                   cnt_inv, eps):
    # x_ref : (nb, G, LK)  lane-dense chunk of the flattened (Cg*HW) group axis
    # x0_ref: (nb, G, Cg)  features at spatial position (0, 0)
    # w_ref, b_ref: (G, Cg) GroupNorm affine parameters
    # o_ref : (nb, G, Cg)  normalized output at spatial position (0, 0)
    # sum_ref, sq_ref: (nb, G) f32 scratch accumulators
    k = pl.program_id(1)

    @pl.when(k == 0)
    def _():
        sum_ref[...] = jnp.zeros_like(sum_ref)
        sq_ref[...] = jnp.zeros_like(sq_ref)

    # Chunked accumulation keeps the f32 upcast and x*x temporaries bounded to
    # one chunk (instead of a full batch element).  Single fused reduce over
    # the combined (Cg*HW) lane axis -- no per-channel intermediates.
    x = x_ref[...].astype(jnp.float32)                    # (nb, G, LK)
    sum_ref[...] += jnp.sum(x, axis=-1)                   # (nb, G)
    sq_ref[...] += jnp.sum(x * x, axis=-1)                # (nb, G)

    @pl.when(k == pl.num_programs(1) - 1)
    def _():
        mean = sum_ref[...] * cnt_inv                     # (nb, G)
        # Single-pass variance can go slightly negative from cancellation.
        var = jnp.maximum(sq_ref[...] * cnt_inv - mean * mean, 0.0)
        inv = jax.lax.rsqrt(var + eps)                    # (nb, G)  (EUP)
        x0 = x0_ref[...].astype(jnp.float32)              # (nb, G, Cg)
        y = (x0 - mean[:, :, None]) * inv[:, :, None]
        y = y * w_ref[...][None] + b_ref[...][None]
        o_ref[...] = y.astype(o_ref.dtype)


def gnneck_head_forward(features, weight, bias, num_groups, eps=1e-5):
    """features: (N, C, H, W); weight/bias: (C,). Returns (N, C) f32."""
    N, C, H, W = features.shape
    G = num_groups
    assert C % G == 0
    Cg = C // G
    HW = H * W
    CgHW = Cg * HW
    cnt_inv = 1.0 / float(CgHW)
    itemsize = features.dtype.itemsize

    # Free, contiguous reshapes (no HBM data movement).
    x = features.reshape(N, G, CgHW)                    # lane-dense stats stream
    x0 = features[:, :, 0, 0].reshape(N, G, Cg)         # tiny (0,0) slice
    w = weight.reshape(G, Cg).astype(jnp.float32)
    b = bias.reshape(G, Cg).astype(jnp.float32)

    # ---- chip-aware VMEM budget --------------------------------------------
    vmem_cap = 64 << 20                                  # conservative default
    try:
        vmem_cap = int(getattr(pltpu.get_tpu_info(), "vmem_capacity_bytes",
                               vmem_cap))
    except Exception:
        pass
    small_vmem = vmem_cap <= (64 << 20)                  # v7x-class (also 2 TCs)
    vmem_limit = (44 << 20) if small_vmem else (96 << 20)
    block_budget = int(vmem_limit * 0.70)                # headroom: out/x0/w/b/pipeline

    def block_bytes(nb, lk):
        # Double-buffered input block (lane/sublane padded) + the f32 upcast
        # and x*x temporaries that live during compute.
        padded = nb * _round_up(G, 8) * _round_up(lk, 128)
        raw = nb * G * lk
        return 2 * padded * itemsize + 2 * raw * 4

    # ---- pick reduction chunk LK and batch tile nb ---------------------------
    if block_bytes(1, CgHW) <= block_budget:
        lk = CgHW                                        # whole axis in one chunk
    else:
        cap = max(CgHW // 2, 128)
        while cap > 128 and block_bytes(1, cap) > block_budget:
            cap //= 2
        lk = _largest_chunk_mult128(CgHW, max(cap, 128))
        if lk == 0:
            # No multiple-of-128 divisor fits under budget; BlockSpec requires
            # 128-multiples or the full dim, so fall back to the full axis.
            # TODO(synk): masked ragged chunks for pathological Cg*HW sizes.
            lk = CgHW
    n_chunks = CgHW // lk

    nb = 1
    while nb < N and block_bytes(nb + 1, lk) <= block_budget:
        nb += 1
    if small_vmem and N >= 2:
        # v7x-class: 2 TensorCores share the "parallel" batch axis -- keep at
        # least two batch blocks.  Single-TC chips keep the biggest block.
        nb = min(nb, (N + 1) // 2)
    nb = max(1, min(nb, N))

    # Safety for extreme shapes where even one (1, G, lk) block overshoots the
    # chip-class budget: raise the declared limit (still below physical VMEM).
    needed = block_bytes(nb, lk) + (8 << 20)
    if needed > vmem_limit:
        hard_cap = (56 << 20) if small_vmem else (120 << 20)
        vmem_limit = min(needed, hard_cap)

    kernel = functools.partial(_gnneck_kernel, cnt_inv=cnt_inv, eps=eps)

    out = pl.pallas_call(
        kernel,
        out_shape=jax.ShapeDtypeStruct((N, G, Cg), jnp.float32),
        grid_spec=pltpu.PrefetchScalarGridSpec(
            num_scalar_prefetch=0,
            # Ragged last batch block is fine: per-row stats are independent
            # and out-of-bounds output rows are masked on writeback.
            grid=(pl.cdiv(N, nb), n_chunks),
            in_specs=[
                pl.BlockSpec((nb, G, lk), lambda n, k: (n, 0, k)),
                pl.BlockSpec((nb, G, Cg), lambda n, k: (n, 0, 0)),
                pl.BlockSpec((G, Cg), lambda n, k: (0, 0)),
                pl.BlockSpec((G, Cg), lambda n, k: (0, 0)),
            ],
            out_specs=pl.BlockSpec((nb, G, Cg), lambda n, k: (n, 0, 0)),
            scratch_shapes=[
                pltpu.VMEM((nb, G), jnp.float32),
                pltpu.VMEM((nb, G), jnp.float32),
            ],
        ),
        compiler_params=pltpu.CompilerParams(
            dimension_semantics=("parallel", "arbitrary"),
            vmem_limit_bytes=int(vmem_limit),
        ),
    )(x, x0, w, b)

    return out.reshape(N, C)                             # free reshape to (N, C)


def _reference(features, weight, bias, num_groups, eps=1e-5):
    N, C, H, W = features.shape
    G = num_groups
    xg = features.reshape(N, G, (C // G) * H * W).astype(jnp.float32)
    mean = xg.mean(axis=-1, keepdims=True)
    var = xg.var(axis=-1, keepdims=True)
    xn = (xg - mean) * jax.lax.rsqrt(var + eps)
    xn = xn.reshape(N, C, H, W)
    y = xn * weight[None, :, None, None] + bias[None, :, None, None]
    return y[..., 0, 0]


if __name__ == "__main__":
    key = jax.random.PRNGKey(0)
    k_x, k_w = jax.random.split(key)

    # Small shapes consistent with the module: N=2, C=64 channels, 8 groups,
    # 4x4 spatial (num_classes is unused by forward).
    N, C, H, W = 2, 64, 4, 4
    num_groups = 8

    features = jax.random.normal(k_x, (N, C, H, W), dtype=jnp.float32)

    # weights_init_kaiming for GroupNorm: weight ~ N(1.0, 0.02), bias = 0.
    weight = 1.0 + 0.02 * jax.random.normal(k_w, (C,), dtype=jnp.float32)
    bias = jnp.zeros((C,), dtype=jnp.float32)

    out = gnneck_head_forward(features, weight, bias, num_groups)
    out = jax.block_until_ready(out)

    ref = _reference(features, weight, bias, num_groups)
    assert out.shape == (N, C)
    assert jnp.allclose(out, ref, atol=1e-5, rtol=1e-5)

    print("KERNEL_OK")
</pallas_src>

<mosaic_0001>
module attributes {stable_mosaic.version = 11 : i64} {
  func.func @_gnneck_kernel(%arg0: i32, %arg1: i32, %arg2: memref<1x8x128xf32, #tpu.memory_space<vmem>>, %arg3: memref<1x8x8xf32, #tpu.memory_space<vmem>>, %arg4: memref<8x8xf32, #tpu.memory_space<vmem>>, %arg5: memref<8x8xf32, #tpu.memory_space<vmem>>, %arg6: memref<1x8x8xf32, #tpu.memory_space<vmem>>, %arg7: memref<1x8xf32, #tpu.memory_space<vmem>>, %arg8: memref<1x8xf32, #tpu.memory_space<vmem>>) attributes {dimension_semantics = [#tpu.dimension_semantics<parallel>, #tpu.dimension_semantics<arbitrary>], iteration_bounds = array<i64: 2, 1>, scalar_prefetch = 0 : i64, scratch_operands = 2 : i64, tpu.core_type = #tpu.core_type<tc>, window_params = [{transform_indices = @transform_0, window_bounds = array<i64: 1, 8, 128>}, {transform_indices = @transform_1, window_bounds = array<i64: 1, 8, 8>}, {pipeline_mode = #tpu.pipeline_mode<synchronous>, transform_indices = @transform_2, window_bounds = array<i64: 8, 8>}, {pipeline_mode = #tpu.pipeline_mode<synchronous>, transform_indices = @transform_3, window_bounds = array<i64: 8, 8>}, {transform_indices = @transform_4, window_bounds = array<i64: 1, 8, 8>}]} {
    %c0_i32 = arith.constant 0 : i32
    %0 = arith.cmpi eq, %arg1, %c0_i32 : i32
    %1 = arith.extui %0 : i1 to i32
    %c0_i32_0 = arith.constant 0 : i32
    %2 = arith.cmpi ne, %1, %c0_i32_0 : i32
    scf.if %2 {
      %cst_14 = arith.constant 0.000000e+00 : f32
      %16 = vector.broadcast %cst_14 : f32 to vector<1x8xf32>
      %c0_15 = arith.constant 0 : index
      %c0_16 = arith.constant 0 : index
      %17 = vector.load %arg7[%c0_15, %c0_16] : memref<1x8xf32, #tpu.memory_space<vmem>>, vector<1x8xf32>
      tpu.vector_store %arg7[%c0_15, %c0_16], %16 {strides = array<i32>} : memref<1x8xf32, #tpu.memory_space<vmem>>, vector<1x8xf32>,
      %cst_17 = arith.constant 0.000000e+00 : f32
      %18 = vector.broadcast %cst_17 : f32 to vector<1x8xf32>
      %c0_18 = arith.constant 0 : index
      %c0_19 = arith.constant 0 : index
      %19 = vector.load %arg8[%c0_18, %c0_19] : memref<1x8xf32, #tpu.memory_space<vmem>>, vector<1x8xf32>
      tpu.vector_store %arg8[%c0_18, %c0_19], %18 {strides = array<i32>} : memref<1x8xf32, #tpu.memory_space<vmem>>, vector<1x8xf32>,
    } else {
    }
    %c0 = arith.constant 0 : index
    %c0_1 = arith.constant 0 : index
    %c0_2 = arith.constant 0 : index
    %3 = vector.load %arg2[%c0, %c0_1, %c0_2] : memref<1x8x128xf32, #tpu.memory_space<vmem>>, vector<1x8x128xf32>
    %c0_3 = arith.constant 0 : index
    %c0_4 = arith.constant 0 : index
    %4 = vector.load %arg7[%c0_3, %c0_4] : memref<1x8xf32, #tpu.memory_space<vmem>>, vector<1x8xf32>
    %cst = arith.constant dense<0.000000e+00> : vector<1x8xf32>
    %5 = vector.multi_reduction <add>, %3, %cst [2] : vector<1x8x128xf32> to vector<1x8xf32>
    %6 = arith.addf %4, %5 : vector<1x8xf32>
    %c0_5 = arith.constant 0 : index
    %c0_6 = arith.constant 0 : index
    %7 = vector.load %arg7[%c0_5, %c0_6] : memref<1x8xf32, #tpu.memory_space<vmem>>, vector<1x8xf32>
    tpu.vector_store %arg7[%c0_5, %c0_6], %6 {strides = array<i32>} : memref<1x8xf32, #tpu.memory_space<vmem>>, vector<1x8xf32>,
    %c0_7 = arith.constant 0 : index
    %c0_8 = arith.constant 0 : index
    %8 = vector.load %arg8[%c0_7, %c0_8] : memref<1x8xf32, #tpu.memory_space<vmem>>, vector<1x8xf32>
    %9 = arith.mulf %3, %3 : vector<1x8x128xf32>
    %cst_9 = arith.constant dense<0.000000e+00> : vector<1x8xf32>
    %10 = vector.multi_reduction <add>, %9, %cst_9 [2] : vector<1x8x128xf32> to vector<1x8xf32>
    %11 = arith.addf %8, %10 : vector<1x8xf32>
    %c0_10 = arith.constant 0 : index
    %c0_11 = arith.constant 0 : index
    %12 = vector.load %arg8[%c0_10, %c0_11] : memref<1x8xf32, #tpu.memory_space<vmem>>, vector<1x8xf32>
    tpu.vector_store %arg8[%c0_10, %c0_11], %11 {strides = array<i32>} : memref<1x8xf32, #tpu.memory_space<vmem>>, vector<1x8xf32>,
    %c0_i32_12 = arith.constant 0 : i32
    %13 = arith.cmpi eq, %arg1, %c0_i32_12 : i32
    %14 = arith.extui %13 : i1 to i32
    %c0_i32_13 = arith.constant 0 : i32
    %15 = arith.cmpi ne, %14, %c0_i32_13 : i32
    scf.if %15 {
      %c0_14 = arith.constant 0 : index
      %c0_15 = arith.constant 0 : index
      %16 = vector.load %arg7[%c0_14, %c0_15] : memref<1x8xf32, #tpu.memory_space<vmem>>, vector<1x8xf32>
      %cst_16 = arith.constant 7.812500e-03 : f32
      %17 = vector.broadcast %cst_16 : f32 to vector<1x8xf32>
      %18 = arith.mulf %16, %17 : vector<1x8xf32>
      %c0_17 = arith.constant 0 : index
      %c0_18 = arith.constant 0 : index
      %19 = vector.load %arg8[%c0_17, %c0_18] : memref<1x8xf32, #tpu.memory_space<vmem>>, vector<1x8xf32>
      %cst_19 = arith.constant 7.812500e-03 : f32
      %20 = vector.broadcast %cst_19 : f32 to vector<1x8xf32>
      %21 = arith.mulf %19, %20 : vector<1x8xf32>
      %22 = arith.mulf %18, %18 : vector<1x8xf32>
      %23 = arith.subf %21, %22 : vector<1x8xf32>
      %cst_20 = arith.constant 0.000000e+00 : f32
      %24 = vector.broadcast %cst_20 : f32 to vector<1x8xf32>
      %25 = arith.maximumf %23, %24 : vector<1x8xf32>
      %cst_21 = arith.constant 9.99999974E-6 : f32
      %26 = vector.broadcast %cst_21 : f32 to vector<1x8xf32>
      %27 = arith.addf %25, %26 : vector<1x8xf32>
      %28 = math.rsqrt %27 : vector<1x8xf32>
      %c0_22 = arith.constant 0 : index
      %c0_23 = arith.constant 0 : index
      %c0_24 = arith.constant 0 : index
      %29 = vector.load %arg3[%c0_22, %c0_23, %c0_24] : memref<1x8x8xf32, #tpu.memory_space<vmem>>, vector<1x8x8xf32>
      %30 = vector.shape_cast %18 : vector<1x8xf32> to vector<1x8x1xf32>
      %31 = vector.broadcast %30 : vector<1x8x1xf32> to vector<1x8x8xf32>
      %32 = arith.subf %29, %31 : vector<1x8x8xf32>
      %33 = vector.shape_cast %28 : vector<1x8xf32> to vector<1x8x1xf32>
      %34 = vector.broadcast %33 : vector<1x8x1xf32> to vector<1x8x8xf32>
      %35 = arith.mulf %32, %34 : vector<1x8x8xf32>
      %c0_25 = arith.constant 0 : index
      %c0_26 = arith.constant 0 : index
      %36 = vector.load %arg4[%c0_25, %c0_26] : memref<8x8xf32, #tpu.memory_space<vmem>>, vector<8x8xf32>
      %37 = vector.shape_cast %36 : vector<8x8xf32> to vector<1x8x8xf32>
      %38 = arith.mulf %35, %37 : vector<1x8x8xf32>
      %c0_27 = arith.constant 0 : index
      %c0_28 = arith.constant 0 : index
      %39 = vector.load %arg5[%c0_27, %c0_28] : memref<8x8xf32, #tpu.memory_space<vmem>>, vector<8x8xf32>
      %40 = vector.shape_cast %39 : vector<8x8xf32> to vector<1x8x8xf32>
      %41 = arith.addf %38, %40 : vector<1x8x8xf32>
      %c0_29 = arith.constant 0 : index
      %c0_30 = arith.constant 0 : index
      %c0_31 = arith.constant 0 : index
      %42 = vector.load %arg6[%c0_29, %c0_30, %c0_31] : memref<1x8x8xf32, #tpu.memory_space<vmem>>, vector<1x8x8xf32>
      tpu.vector_store %arg6[%c0_29, %c0_30, %c0_31], %41 {strides = array<i32>} : memref<1x8x8xf32, #tpu.memory_space<vmem>>, vector<1x8x8xf32>,
    } else {
    }
    return
  }
  func.func @transform_0(%arg0: i32, %arg1: i32) -> (i32, i32, i32) {
    %c0_i32 = arith.constant 0 : i32
    %c0_i32_0 = arith.constant 0 : i32
    return %arg0, %c0_i32, %arg1 : i32, i32, i32
  }
  func.func @transform_1(%arg0: i32, %arg1: i32) -> (i32, i32, i32) {
    %c0_i32 = arith.constant 0 : i32
    %c0_i32_0 = arith.constant 0 : i32
    %c0_i32_1 = arith.constant 0 : i32
    return %arg0, %c0_i32, %c0_i32_0 : i32, i32, i32
  }
  func.func @transform_2(%arg0: i32, %arg1: i32) -> (i32, i32) {
    %c0_i32 = arith.constant 0 : i32
    %c0_i32_0 = arith.constant 0 : i32
    %c0_i32_1 = arith.constant 0 : i32
    return %c0_i32, %c0_i32_0 : i32, i32
  }
  func.func @transform_3(%arg0: i32, %arg1: i32) -> (i32, i32) {
    %c0_i32 = arith.constant 0 : i32
    %c0_i32_0 = arith.constant 0 : i32
    %c0_i32_1 = arith.constant 0 : i32
    return %c0_i32, %c0_i32_0 : i32, i32
  }
  func.func @transform_4(%arg0: i32, %arg1: i32) -> (i32, i32, i32) {
    %c0_i32 = arith.constant 0 : i32
    %c0_i32_0 = arith.constant 0 : i32
    %c0_i32_1 = arith.constant 0 : i32
    return %arg0, %c0_i32, %c0_i32_0 : i32, i32, i32
  }
}

</mosaic_0001>

<bundles_post_ra>
// kernel: tpu_custom_call.1
= control target key start
LH: loop header
LB: loop body
LE: loop exit
PB: predicated region body
PF: predicated region fallthrough
CT: control target
= control target key end

     0   :  { %s1255_s0 = inlined_call_operand.hbm [shape: f32[2,8,128], index: 0, kind: input, shape index: {}]   ;;  %s1256_s1 = inlined_call_operand.hbm [shape: f32[2,8,8], index: 1, kind: input, shape index: {}]   ;;  %s1257_s2 = inlined_call_operand.hbm [shape: f32[8,8], index: 2, kind: input, shape index: {}]   ;;  %s1258_s3 = inlined_call_operand.hbm [shape: f32[8,8], index: 3, kind: input, shape index: {}]   ;;  %s1259_s4 = inlined_call_operand.hbm [shape: f32[2,8,8], index: 4, kind: output, shape index: {}]  }
   0x1   :  { %1263 = sst [smem:[#allocation18_spill]] %s1255_s0 }
   0x2   :  { %1264 = sst [smem:[#allocation19_spill]] %s1256_s1 }
   0x3   :  { %9 = vsyncpa [#allocation5], 0 }
   0x4   :  { %11 = vsyncpa [#allocation5 + $0x1], 0 }
   0x5   :  { %12 = vsyncpa [#allocation8], 0 }
   0x6   :  { %14 = vsyncpa [#allocation8 + $0x1], 0 }
   0x7   :  { %15 = vsyncpa [#allocation11], 0 }
   0x8   :  { %16 = vsyncpa [#allocation6], 0 }
   0x9   :  { %18 = vsyncpa [#allocation6 + $0x1], 0  ;;  %s1040_s15 = smov 0   ;;  %s1042_s16 = smov 0  }
   0xa   :  { %s1044_s17 = smov 0   ;;  %s1046_s18 = smov 0  }
   0xb   :  { %s1048_s19 = smov 0   ;;  %s1050_s20 = smov 0  }
   0xc LB: > { %s1071_s21 = sadd.s32 4294967295, %s1005_s20   ;;  %s691_s22 = sadd.s32 4294967294, %s1005_s20   ;;  %s1005_s20 = sphi %s1050_s20, %s24_s20   ;;  %s1001_s19 = sphi %s1048_s19, %s1286_s19   ;;  %s997_s18 = sphi %s1046_s18, %s1285_s18   ;;  %s993_s17 = sphi %s1044_s17, %s1284_s17   ;;  %s989_s16 = sphi %s1042_s16, %s1283_s16   ;;  %s985_s15 = sphi %s1040_s15, %s1282_s15  }
   0xd   : > { %p58_p0 = scmp.ne.s32.totalorder %s989_s16, %s985_s15  ;;  %p1260_p1 = scmp.eq.s32.totalorder %s1071_s21, 0 }
   0xe   : > { %p156_p3 = scmp.eq.s32.totalorder %s691_s22, 1  ;;  %p692_p5 = scmp.ge.s32.totalorder %s1005_s20, 1 }
   0xf   : > { %p1080_p4 = por %p1260_p1, %p58_p0  ;;  %p163_p7 = scmp.lt.s32.totalorder %s1005_s20, 3 }
  0x10   : > { %p1085_p6 = por %p156_p3, %p58_p0  ;;  %s1007_s26 = smov [#allocation9]  }
  0x11   : > { %s1265_s23 = scalar_select %p1080_p4, 1, 0 }
  0x12   : > { %s1266_s24 = scalar_select %p1085_p6, 1, 0 }
  0x13   : > { %p1090_p8 = pnand %p692_p5, %p163_p7  ;;  %s176_s27 = sshll.u32 %s1007_s26, 4  ;;  %s177_s27 = int_to_ptr.vmem [resolvable:$true] %s176_s27 }
  0x14   : > { %s1008_s28 = smov [#allocation10]   ;;  %s816_s5 = scalar_lea.vmem %s177_s27, 128 }
  0x15   : > { %s1267_s25 = scalar_select %p1090_p8, 1, 0 }
  0x16   : > { %p724_p10 = pneg %p1090_p8  ;;  %s187_s29 = sshll.u32 %s1008_s28, 4  ;;  %s188_s29 = int_to_ptr.vmem [resolvable:$true] %s187_s29 }
  0x17   : > { %p817_p13 = scmp.ne.s32.totalorder %s177_s27, %s816_s5  ;;  %p824_p5 = scmp.lt.s32.totalorder %s177_s27, %s177_s27 }
  0x18   : > { %p1099_p11 = pnand %p724_p10, %p1260_p1  ;;  %p825_p7 = scmp.lt.s32.totalorder %s816_s5, %s816_s5 }
  0x1a   : > { %p807_p12 = pneg %p1099_p11  ;;  %p826_p9 = por %p825_p7, %p824_p5 }
  0x1c   : > { %p819_p0 = pnand %p817_p13, %p807_p12 }
  0x1e   : > { %p820_p3 = pneg %p819_p0 }
  0x20   : > { %p827_p2 = pnand %p826_p9, %p820_p3 }
  0x22   : > { %830 = shalt.err (!%p827_p2)
}
  0x23   : > { %727 = dma.hbm_to_vmem [thread:$0]  (!%p1099_p11), %s1257_s2, 128, %s177_s27, [#allocation8]  }
  0x24   : > { %s842_s8 = scalar_lea.vmem %s188_s29, 128  ;;  %p850_p13 = scmp.lt.s32.totalorder %s188_s29, %s188_s29 }
  0x25   : > { %p843_p10 = scmp.ne.s32.totalorder %s188_s29, %s842_s8  ;;  %p851_p0 = scmp.lt.s32.totalorder %s842_s8, %s842_s8 }
  0x27   : > { %p845_p1 = pnand %p843_p10, %p807_p12  ;;  %p852_p4 = por %p851_p0, %p850_p13 }
  0x29   : > { %p846_p6 = pneg %p845_p1 }
  0x2b   : > { %p853_p8 = pnand %p852_p4, %p846_p6 }
  0x2d   : > { %856 = shalt.err (!%p853_p8)
}
  0x2e   : > { %730 = dma.hbm_to_vmem [thread:$0]  (!%p1099_p11), %s1258_s3, 128, %s188_s29, [#allocation11]  }
  0x2f   : > { %s36_s11 = sadd.s32 1, %s1001_s19  ;;  %s45_s12 = sadd.s32 1, %s993_s17 }
  0x30   : > { %p38_p1 = scmp.ge.s32.totalorder %s36_s11, 2  ;;  %p52_p2 = scmp.ne.s32.totalorder %s993_s17, %s989_s16 }
  0x31   : > { %p53_p4 = scmp.eq.s32.totalorder %s1005_s20, 0  ;;  %p744_p6 = scmp.lt.s32.totalorder %s1005_s20, 2 }
  0x32   : > { %s1288_s11 = smov (%p38_p1, %s36_s11), 0  ;;  %p1269_p9 = scmp.eq.s32.totalorder %s1071_s21, 1 }
  0x33   : > { %p54_p8 = por %p53_p4, %p52_p2  ;;  %s40_s14 = ssub.s32 %s1001_s19, %s1288_s11 }
  0x34   : > { %p1131_p12 = por %p1269_p9, %p52_p2  ;;  %s198_s22 = sand.u32 1, %s993_s17  }
  0x35   : > { %p43_p3 = scmp.eq.s32.totalorder %s40_s14, 0  ;;  %s696_s26 = sshll.u32 %s198_s22, 3 }
  0x36   : > { %s697_s27 = sshll.u32 %s1001_s19, 7  ;;  %s1271_s0 = sld [smem:[#allocation18_spill]] }
  0x37   : > { %s1140_s28 = scalar_select %p43_p3, %s993_s17, %s45_s12  }
  0x38   : > { %s202_s6 = scalar_lea.vmem [#allocation4], %s696_s26  ;;  %p1147_p11 = pnand %p744_p6, %p54_p8 }
  0x39   : > { %s210_s7 = sshll.u32 %s202_s6, 4  ;;  %s1273_s1 = sld [smem:[#allocation19_spill]]  ;;  %s211_s7 = int_to_ptr.vmem [resolvable:$true] %s210_s7 }
  0x3a   : > { %s199_s12 = scalar_lea.sflag [#allocation5], %s198_s22  ;;  %p859_p5 = pneg %p1147_p11 }
  0x3b   : > { %s870_s29 = scalar_lea.vmem %s211_s7, 128  ;;  %s1009_s30 = smov [#allocation4]  }
  0x3c   : > { %s208_s5 = scalar_lea.hbm %s1271_s0, %s697_s27  ;;  %p871_p7 = scmp.ne.s32.totalorder %s211_s7, %s870_s29 }
  0x3d   : > { %s875_s6 = sshll.u32 %s1009_s30, 4  ;;  %s876_s6 = int_to_ptr.vmem [resolvable:$false] %s875_s6 }
  0x3e   : > { %p873_p10 = pnand %p871_p7, %p859_p5  ;;  %s877_s0 = scalar_lea.vmem %s876_s6, 256 }
  0x3f   : > { %s1154_s14 = scalar_lea.hbm %s1273_s1, %s697_s27  ;;  %p878_p0 = scmp.lt.s32.totalorder %s211_s7, %s876_s6 }
  0x40   : > { %p874_p13 = pneg %p873_p10  ;;  %p879_p1 = scmp.lt.s32.totalorder %s877_s0, %s870_s29 }
  0x42   : > { %p880_p2 = por %p879_p1, %p878_p0 }
  0x44   : > { %p881_p4 = pnand %p880_p2, %p874_p13 }
  0x46   : > { %884 = shalt.err (!%p881_p4)
}
  0x47   : > { %734 = dma.hbm_to_vmem [thread:$0]  (!%p1147_p11), %s208_s5, 128, %s211_s7, %s199_s12  }
  0x48   : > { %s217_s22 = sand.u32 1, %s1005_s20   ;;  %s221_s27 = scalar_lea.vmem [#allocation7], %s696_s26 }
  0x49   : > { %s228_s9 = sshll.u32 %s221_s27, 4  ;;  %s218_s10 = scalar_lea.sflag [#allocation8], %s217_s22  ;;  %s229_s9 = int_to_ptr.vmem [resolvable:$true] %s228_s9 }
  0x4a   : > { %s898_s1 = scalar_lea.vmem %s229_s9, 128  ;;  %s1010_s0 = smov [#allocation7]  }
  0x4b   : > { %p899_p6 = scmp.ne.s32.totalorder %s229_s9, %s898_s1  ;;  %s903_s29 = sshll.u32 %s1010_s0, 4  ;;  %s904_s29 = int_to_ptr.vmem [resolvable:$false] %s903_s29 }
  0x4c   : > { %s905_s30 = scalar_lea.vmem %s904_s29, 256  ;;  %p906_p3 = scmp.lt.s32.totalorder %s229_s9, %s904_s29 }
  0x4d   : > { %p901_p8 = pnand %p899_p6, %p859_p5  ;;  %p907_p7 = scmp.lt.s32.totalorder %s905_s30, %s898_s1 }
  0x4f   : > { %p902_p9 = pneg %p901_p8  ;;  %p908_p10 = por %p907_p7, %p906_p3 }
  0x51   : > { %p909_p13 = pnand %p908_p10, %p902_p9 }
  0x53   : > { %912 = shalt.err (!%p909_p13)
}
  0x54   : > { %737 = dma.hbm_to_vmem [thread:$0]  (!%p1147_p11), %s1154_s14, 128, %s229_s9, %s218_s10  }
  0x55   : > { %p1274_p0 = scmp.ne.s32.totalorder %s1267_s25, 0 }
  0x56   : > { %s1173_s26 = sand.u32 (!%p1274_p0), 1, %s989_s16   ;;  %p1275_p5 = scmp.ne.s32.totalorder (!%p1274_p0), %s1265_s23, 0 }
  0x57   : > { %237 = sbr.rel (%p1274_p0) target bundleno = 559 (0x22f), region = 36  ;;  %s1176_s5 = sshll.u32 (!%p1274_p0), %s1173_s26, 3 }
  0x58   : > { %s240_s1 = scalar_lea.sflag (!%p1274_p0), [#allocation5], %s1173_s26  ;;  %s243_s7 = scalar_lea.vmem (!%p1274_p0), [#allocation4], %s1176_s5 }
  0x5c   : > { %964 = dma.done.wait (%p1275_p5), %s240_s1, 128  }
  0x5d   : > { %966 = vsyncadd (%p1275_p5), %s240_s1, 4294967168  ;;  %s248_s25 = sand.u32 1, %s1071_s21   ;;  %s252_s14 = scalar_lea.vmem [#allocation7], %s1176_s5 }
  0x5e   : > { %s249_s8 = scalar_lea.sflag [#allocation8], %s248_s25 }
  0x5f   : > { %968 = dma.done.wait (%p1275_p5), %s249_s8, 128  }
  0x60   : > { %970 = vsyncadd (%p1275_p5), %s249_s8, 4294967168  ;;  %p1276_p11 = scmp.eq.s32.totalorder %s1071_s21, 0 }
  0x62   : > { %972 = dma.done.wait (%p1276_p11), [#allocation8], 128   ;;  %p1277_p1 = pmov %p1276_p11 }
  0x64   : > { %974 = vsyncadd (%p1277_p1), [#allocation8], 4294967168  ;;  %p1278_p2 = pmov %p1277_p1 }
  0x65   : > { %p1279_p4 = pmov %p1277_p1 }
  0x66   : > { %976 = dma.done.wait (%p1278_p2), [#allocation11], 128  }
  0x67   : > { %978 = vsyncadd (%p1279_p4), [#allocation11], 4294967168  ;;  %v297_v0 = vld [vmem:[%s243_s7] sm:$0xff]  ;;  %v1011_v2 = vmov 0   ;;  %v302_v3 = vlaneseq  ;;  %vm294_vm0 = vcmask 57344   ;;  %v1012_v6 = vmov 0.0  }
  0x68   : > { %299 = vadd.xlane.f32.xlu0 %v297_v0  ;;  %v411_v1 = vmul.f32 %v297_v0, %v297_v0  ;;  %801 = vset.pattern.permute.xlu1 %v1011_v2  ;;  %295 = vst.msk [vmem:[#allocation2] sm:$0x1] %vm294_vm0, %v1012_v6  ;;  %296 = vst.msk [vmem:[#allocation3] sm:$0x1] %vm294_vm0, %v1012_v6  ;;  %v1013_v8 = vmov 1966171168  }
  0x69   : > { %802 = vset.pattern.permute.xlu0 %v1011_v2  ;;  %v303_v4 = vshrl.u32 %v302_v3, 7  ;;  %v387_v5 = vand.u32 127, %v302_v3  ;;  %v339_v9 = vunpack.c.l.s4 %v1013_v8  ;;  %s707_s21 = sshll.u32 %s997_s18, 7  ;;  %s289_s23 = scalar_lea.vmem [#allocation12], %s1176_s5  ;;  %vm553_vm1 = vcmask 64512  }
  0x6a   : > { %s569_s12 = sshll.u32 %s289_s23, 4  ;;  %s567_s27 = scalar_lea.hbm %s1259_s4, %s707_s21  ;;  %s570_s12 = int_to_ptr.vmem [resolvable:$true] %s569_s12 }
  0x6b   : > { %v1200_v7 = vsub.s32 %v387_v5, %v303_v4  ;;  %v340_v10 = vunpack.c.0.s8 %v339_v9  ;;  %v1202_v11 = vsub.s32 0, %v303_v4  ;;  %v308_v12 = vsub.s32 1, %v303_v4  ;;  %s556_s9 = scalar_lea.sflag [#allocation6], %s1173_s26  ;;  %s913_s10 = scalar_lea.vmem %s570_s12, 128 }
  0x6c   : > { %412 = vadd.xlane.f32.xlu0 %v411_v1  ;;  %v312_v13 = vsub.s32 2, %v303_v4  ;;  %v316_v14 = vsub.s32 3, %v303_v4  ;;  %v320_v15 = vsub.s32 4, %v303_v4  ;;  %v324_v16 = vsub.s32 5, %v303_v4  ;;  %p914_p6 = scmp.ne.s32.totalorder %s570_s12, %s913_s10  ;;  %s1014_s0 = smov [#allocation12]  }
  0x6d   : > { %v328_v17 = vsub.s32 6, %v303_v4  ;;  %v332_v18 = vsub.s32 7, %v303_v4  ;;  %v343_v20 = vsub.s32 %v340_v10, %v303_v4  ;;  %s917_s29 = sshll.u32 %s1014_s0, 4  ;;  %s918_s29 = int_to_ptr.vmem [resolvable:$false] %s917_s29 }
  0x6e   : > { %p915_p8 = pnand %p914_p6, %p1131_p12  ;;  %s919_s18 = scalar_lea.vmem %s918_s29, 256 }
  0x6f   : > { %v298_v3 = vld [vmem:[#allocation2] sm:$0x1]  ;;  %v410_v10 = vld [vmem:[#allocation3] sm:$0x1]  ;;  %p920_p3 = scmp.lt.s32.totalorder %s570_s12, %s918_s29  ;;  %p921_p7 = scmp.lt.s32.totalorder %s919_s18, %s913_s10 }
  0x70   : > { %p916_p9 = pneg %p915_p8 }
  0x71   : > { %p922_p10 = por %p921_p7, %p920_p3 }
  0x73   : > { %p923_p13 = pnand %p922_p10, %p916_p9 }
  0xf1   : > { %v300_v19 = vpop.xlane.xlu0 %299 }
  0xf2   : > { %v305_v21 = vrot.slane %v300_v19, %v1202_v11  ;;  %v309_v22 = vrot.slane %v300_v19, %v308_v12  ;;  %v313_v23 = vrot.slane %v300_v19, %v312_v13  ;;  %v317_v24 = vrot.slane %v300_v19, %v316_v14 }
  0xf3   : > { %v321_v25 = vrot.slane %v300_v19, %v320_v15  ;;  %v325_v26 = vrot.slane %v300_v19, %v324_v16  ;;  %v329_v27 = vrot.slane %v300_v19, %v328_v17  ;;  %v333_v28 = vrot.slane %v300_v19, %v332_v18 }
  0xf4   : > { %v334_v29 = vcombine.low %v305_v21, %v309_v22  ;;  %v335_v30 = vcombine.low %v313_v23, %v317_v24  ;;  %v532_v24 = vld [vmem:[%s252_s14] sm:$0xff] }
  0xf5   : > { %v413_v31 = vpop.xlane.xlu0 %412  ;;  %v336_v32 = vcombine.low %v321_v25, %v325_v26  ;;  %v337_v33 = vcombine.low %v329_v27, %v333_v28  ;;  %v549_v27 = vld [vmem:[#allocation9] sm:$0xff] }
  0xf6   : > { %v344_v34 = vrot.slane %v334_v29, %v343_v20  ;;  %v351_v35 = vrot.slane %v335_v30, %v343_v20  ;;  %v418_v36 = vrot.slane %v413_v31, %v1202_v11  ;;  %v422_v37 = vrot.slane %v413_v31, %v308_v12  ;;  %v551_v30 = vld [vmem:[#allocation10] sm:$0xff] }
  0xf7   : > { %v358_v38 = vrot.slane %v336_v32, %v343_v20  ;;  %v365_v39 = vrot.slane %v337_v33, %v343_v20  ;;  %v426_v40 = vrot.slane %v413_v31, %v312_v13  ;;  %v430_v41 = vrot.slane %v413_v31, %v316_v14 }
  0xf8   : > { %v366_v42 = vcombine.low %v344_v34, %v351_v35  ;;  %v434_v43 = vrot.slane %v413_v31, %v320_v15  ;;  %v438_v44 = vrot.slane %v413_v31, %v324_v16  ;;  %v442_v45 = vrot.slane %v413_v31, %v328_v17 }
  0xf9   : > { %v367_v46 = vcombine.low %v358_v38, %v365_v39  ;;  %v446_v47 = vrot.slane %v413_v31, %v332_v18  ;;  %v447_v48 = vcombine.low %v418_v36, %v422_v37  ;;  %v448_v49 = vcombine.low %v426_v40, %v430_v41 }
  0xfa   : > { %v374_v50 = vrot.slane %v366_v42, %v343_v20  ;;  %v449_v51 = vcombine.low %v434_v43, %v438_v44 }
  0xfb   : > { %v381_v52 = vrot.slane %v367_v46, %v343_v20  ;;  %v450_v53 = vcombine.low %v442_v45, %v446_v47  ;;  %v457_v54 = vrot.slane %v447_v48, %v343_v20  ;;  %v464_v55 = vrot.slane %v448_v49, %v343_v20 }
  0xfc   : > { %v471_v56 = vrot.slane %v449_v51, %v343_v20 }
  0xfd   : > { %v382_v57 = vcombine.low %v374_v50, %v381_v52  ;;  %v478_v58 = vrot.slane %v450_v53, %v343_v20  ;;  %v479_v59 = vcombine.low %v457_v54, %v464_v55 }
  0xff   : > { %384 = vperm.xlu1 %801, %v382_v57   ;;  %v480_v60 = vcombine.low %v471_v56, %v478_v58  ;;  %v487_v61 = vrot.slane %v479_v59, %v343_v20 }
 0x101   : > { %v494_v62 = vrot.slane %v480_v60, %v343_v20 }
 0x103   : > { %v495_v63 = vcombine.low %v487_v61, %v494_v62 }
 0x105   : > { %497 = vperm.xlu1 %801, %v495_v63  }
 0x17a   : > { %v385_v0 = vpop.permute.xlu1 %384 }
 0x17b   : > { %v391_v1 = vrot.slane %v385_v0, %v1200_v7 }
 0x17d   : > { %v398_v2 = vrot.slane %v391_v1, %v343_v20 }
 0x17f   : > { %v405_v4 = vrot.slane %v398_v2, %v343_v20 }
 0x180   : > { %v498_v5 = vpop.permute.xlu1 %497 }
 0x181   : > { %v407_v6 = vadd.f32 %v405_v4, %v298_v3  ;;  %v502_v8 = vrot.slane %v498_v5, %v1200_v7 }
 0x183   : > { %409 = vst.msk [vmem:[#allocation2] sm:$0x1] %vm294_vm0, %v407_v6  ;;  %v509_v9 = vrot.slane %v502_v8, %v343_v20 }
 0x185   : > { %v516_v12 = vrot.slane %v509_v9, %v343_v20 }
 0x187   : > { %v518_v13 = vadd.f32 %v516_v12, %v410_v10 }
 0x189   : > { %519 = vst.msk [vmem:[#allocation3] sm:$0x1] %vm294_vm0, %v518_v13 }
 0x18a   : > { %v523_v14 = vld [vmem:[#allocation2] sm:$0x1] }
 0x18b   : > { %v524_v15 = vmul.f32 0.0078125, %v523_v14 }
 0x18d   : > { %v536_v16 = vrot.slane %v524_v15, %v1202_v11  ;;  %v527_v19 = vmul.f32 %v524_v15, %v524_v15 }
 0x18f   : > { %538 = vbcast.lane.b32.xlu0 %v536_v16, 256 }
 0x190   : > { %v525_v17 = vld [vmem:[#allocation3] sm:$0x1] }
 0x191   : > { %v526_v18 = vmul.f32 0.0078125, %v525_v17 }
 0x193   : > { %v528_v7 = vsub.f32 %v526_v18, %v527_v19 }
 0x195   : > { %v529_v21 = vmax.f32 %v528_v7, 0.0 }
 0x197   : > { %v530_v22 = vadd.f32 1e-05, %v529_v21 }
 0x199   : > { %803 = vrsqrt.f32 %v530_v22 }
 0x1a6   : > { %v804_v23 = vpop.eup %803 }
 0x1a7   : > { %v544_v20 = vrot.slane %v804_v23, %v1202_v11 }
 0x1a9   : > { %546 = vbcast.lane.b32.xlu1 %v544_v20, 256 }
 0x201   : > { %v539_v25 = vpop.permute.xlu0 %538 }
 0x202   : > { %v540_v26 = vsub.f32 %v532_v24, %v539_v25 }
 0x21b   : > { %v547_v28 = vpop.permute.xlu1 %546 }
 0x21c   : > { %v548_v29 = vmul.f32 %v547_v28, %v540_v26 }
 0x21e   : > { %v550_v31 = vmul.f32 %v549_v27, %v548_v29 }
 0x220   : > { %v552_v32 = vadd.f32 %v551_v30, %v550_v31 }
 0x222   : > { %554 = vst.msk [vmem:[%s289_s23] sm:$0xff] %vm553_vm1, %v552_v32 }
 0x223   : > { %926 = shalt.err (!%p923_p13)
}
 0x224   : > { %s927_s30 = scalar_lea.hbm %s567_s27, 128  ;;  %s931_s1 = scalar_lea.hbm %s1259_s4, 256 }
 0x225   : > { %p928_p0 = scmp.ne.s32.totalorder %s567_s27, %s927_s30  ;;  %p932_p1 = scmp.lt.s32.totalorder %s567_s27, %s1259_s4 }
 0x226   : > { %p933_p2 = scmp.lt.s32.totalorder %s931_s1, %s927_s30 }
 0x227   : > { %p929_p5 = pnand %p928_p0, %p1131_p12 }
 0x228   : > { %p934_p4 = por %p933_p2, %p932_p1 }
 0x229   : > { %p930_p11 = pneg %p929_p5 }
 0x22b   : > { %p935_p6 = pnand %p934_p4, %p930_p11 }
 0x22d   : > { %938 = shalt.err (!%p935_p6)
}
 0x22e   : > { %722 = dma.vmem_to_hbm [thread:$0]  (%p1131_p12), %s570_s12, 128, %s567_s27, %s556_s9  }
 0x22f PF: > { %s581_s8 = sand.u32 1, %s985_s15   ;;  %p1280_p8 = scmp.ne.s32.totalorder %s1266_s24, 0 }
 0x230   : > { %p1281_p9 = scmp.ge.s32.totalorder %s1005_s20, 2  ;;  %s582_s14 = scalar_lea.sflag [#allocation6], %s581_s8 }
 0x232   : > { %p739_p3 = pnand %p1281_p9, %p1280_p8 }
 0x234   : > { %p740_p7 = pneg %p739_p3 }
 0x236   : > { %980 = dma.done.wait (%p740_p7), %s582_s14, 128  }
 0x237   : > { %982 = vsyncadd (%p740_p7), %s582_s14, 4294967168  ;;  %s24_s20 = sadd.s32 1, %s1005_s20   ;;  %s1282_s15 = smov %s989_s16 }
 0x238   : > { %p21_p10 = scmp.ge.s32.totalorder %s24_s20, 4   ;;  %s1283_s16 = smov %s993_s17 }
 0x239   : > { %s1284_s17 = smov %s1140_s28  ;;  %s1285_s18 = smov %s1001_s19 }
 0x23a   : > { %s1286_s19 = smov %s1288_s11  ;;  %23 = sbr.rel (!%p21_p10) target bundleno = 12 (0xc), region = 110 }
 0x23f   :  { %587 = vsyncpa [#allocation5], 1 }
 0x240   :  { %589 = vsyncpa [#allocation5 + $0x1], 1 }
 0x241   :  { %590 = vsyncpa [#allocation8], 1 }
 0x242   :  { %592 = vsyncpa [#allocation8 + $0x1], 1 }
 0x243   :  { %593 = vsyncpa [#allocation11], 1 }
 0x244   :  { %594 = vsyncpa [#allocation6], 1 }
 0x245   :  { %596 = vsyncpa [#allocation6 + $0x1], 1 }

</bundles_post_ra>
